<compile_context>
chip_gen: v7x
topology: tpu7x:2x2x1
jax: 0.10.0
libtpu: 0.0.40
codegen_flags: <defaults>
</compile_context>

<pallas_src>
import functools

import jax
import jax.numpy as jnp
from jax.experimental import pallas as pl
from jax.experimental.pallas import tpu as pltpu

# Logical (PyTorch) dims and lane-padded dims.
IN_F, H1_F, H2_F, OUT_F = 28 * 28, 500, 250, 10
IN_P, H1_P, H2_P, OUT_P = 896, 512, 256, 128      # multiples of 128
TB_MAX = 256                                      # max MXU-aligned batch tile


def mlp_kernel(x_ref, w1_ref, b1_ref, w2_ref, b2_ref, w3_ref, b3_ref, o_ref):
    # x_ref: (TB, IN_P) bf16.  Weights bf16, biases f32.  Output f32 (TB, OUT_P).
    h1 = jnp.dot(x_ref[...], w1_ref[...], preferred_element_type=jnp.float32)
    h1 = jnp.maximum(h1 + b1_ref[...], 0.0).astype(jnp.bfloat16)      # relu(fc1)
    h2 = jnp.dot(h1, w2_ref[...], preferred_element_type=jnp.float32)
    h2 = jnp.maximum(h2 + b2_ref[...], 0.0).astype(jnp.bfloat16)      # relu(fc2)
    o_ref[...] = (
        jnp.dot(h2, w3_ref[...], preferred_element_type=jnp.float32) + b3_ref[...]
    )                                                                 # fc3


def _pad_to(a, shape):
    """Zero-pad `a` up to `shape` (trailing pad only)."""
    pads = [(0, t - s) for s, t in zip(a.shape, shape)]
    return jnp.pad(a, pads)


@functools.partial(jax.jit, static_argnames=())
def net_forward(x, params):
    """x: (B, 1, 28, 28) or (B, 784) float32. Returns logits (B, 10) float32."""
    w1, b1, w2, b2, w3, b3 = params
    xb = x.reshape(-1, IN_F).astype(jnp.float32)          # x.view(-1, 784)
    B = xb.shape[0]

    # Adaptive batch tile: sublane-aligned (8) for tiny batches, MXU-sized cap.
    tb = min(TB_MAX, pl.cdiv(B, 8) * 8)
    Bp = pl.cdiv(B, tb) * tb                              # pad batch to tile
    grid = (Bp // tb,)

    # Zero-padded, bf16 matmul operands; biases stay f32 and lane-padded.
    xp = _pad_to(xb, (Bp, IN_P)).astype(jnp.bfloat16)
    w1p = _pad_to(w1, (IN_P, H1_P)).astype(jnp.bfloat16)
    w2p = _pad_to(w2, (H1_P, H2_P)).astype(jnp.bfloat16)
    w3p = _pad_to(w3, (H2_P, OUT_P)).astype(jnp.bfloat16)
    b1p = _pad_to(b1, (1, H1_P)).astype(jnp.float32)
    b2p = _pad_to(b2, (1, H2_P)).astype(jnp.float32)
    b3p = _pad_to(b3, (1, OUT_P)).astype(jnp.float32)

    # Weights/biases: constant block index -> stay resident in VMEM across steps.
    resident = lambda shape: pl.BlockSpec(shape, lambda i: (0, 0))

    flops = 2 * Bp * (IN_P * H1_P + H1_P * H2_P + H2_P * OUT_P)
    bytes_accessed = (
        xp.size * 2
        + (w1p.size + w2p.size + w3p.size) * 2
        + (b1p.size + b2p.size + b3p.size) * 4
        + Bp * OUT_P * 4
    )

    out_padded = pl.pallas_call(
        mlp_kernel,
        out_shape=jax.ShapeDtypeStruct((Bp, OUT_P), jnp.float32),
        grid=grid,
        in_specs=[
            pl.BlockSpec((tb, IN_P), lambda i: (i, 0)),   # x: batch-tiled
            resident((IN_P, H1_P)), resident((1, H1_P)),
            resident((H1_P, H2_P)), resident((1, H2_P)),
            resident((H2_P, OUT_P)), resident((1, OUT_P)),
        ],
        out_specs=pl.BlockSpec((tb, OUT_P), lambda i: (i, 0)),
        compiler_params=pltpu.CompilerParams(
            dimension_semantics=("parallel",),            # megacore on v7x
            vmem_limit_bytes=32 << 20,                    # kernel needs only a few MiB
        ),
        cost_estimate=pl.CostEstimate(
            flops=flops, transcendentals=0, bytes_accessed=bytes_accessed),
    )(xp, w1p, b1p, w2p, b2p, w3p, b3p)

    return out_padded[:B, :OUT_F]


def init_params(key):
    """Deterministic init matching nn.Linear shapes (stored transposed: (in, out))."""
    ks = jax.random.split(key, 6)

    def linear(kw, kb, fan_in, fan_out):
        bound = 1.0 / jnp.sqrt(fan_in)
        w = jax.random.uniform(kw, (fan_in, fan_out), jnp.float32, -bound, bound)
        b = jax.random.uniform(kb, (1, fan_out), jnp.float32, -bound, bound)
        return w, b

    w1, b1 = linear(ks[0], ks[1], IN_F, H1_F)
    w2, b2 = linear(ks[2], ks[3], H1_F, H2_F)
    w3, b3 = linear(ks[4], ks[5], H2_F, OUT_F)
    return (w1, b1, w2, b2, w3, b3)


def net_forward_ref(x, params):
    """Pure-JAX f32 reference for correctness check."""
    w1, b1, w2, b2, w3, b3 = params
    xb = x.reshape(-1, IN_F).astype(jnp.float32)
    h1 = jnp.maximum(xb @ w1 + b1, 0.0)
    h2 = jnp.maximum(h1 @ w2 + b2, 0.0)
    return h2 @ w3 + b3


if __name__ == "__main__":
    key = jax.random.PRNGKey(0)
    kx, kp = jax.random.split(key)

    # Small MNIST-like batch: (batch=2, channels=1, 28, 28) NCHW, as in PyTorch.
    x = jax.random.normal(kx, (2, 1, 28, 28), dtype=jnp.float32)
    params = init_params(kp)

    out = net_forward(x, params)
    out = jax.block_until_ready(out)

    ref = net_forward_ref(x, params)
    assert out.shape == (2, 10)
    # bf16 MXU inputs (f32 accumulation) -> relax tolerance vs f32 reference.
    assert jnp.allclose(out, ref, atol=2e-2, rtol=2e-2), "mismatch vs reference"

    print("KERNEL_OK")
</pallas_src>

<mosaic_0001>
module attributes {stable_mosaic.version = 11 : i64} {
  func.func @mlp_kernel(%arg0: i32, %arg1: memref<8x896xbf16, #tpu.memory_space<vmem>>, %arg2: memref<896x512xbf16, #tpu.memory_space<vmem>>, %arg3: memref<1x512xf32, #tpu.memory_space<vmem>>, %arg4: memref<512x256xbf16, #tpu.memory_space<vmem>>, %arg5: memref<1x256xf32, #tpu.memory_space<vmem>>, %arg6: memref<256x128xbf16, #tpu.memory_space<vmem>>, %arg7: memref<1x128xf32, #tpu.memory_space<vmem>>, %arg8: memref<8x128xf32, #tpu.memory_space<vmem>>) attributes {dimension_semantics = [#tpu.dimension_semantics<parallel>], iteration_bounds = array<i64: 1>, scalar_prefetch = 0 : i64, scratch_operands = 0 : i64, tpu.core_type = #tpu.core_type<tc>, window_params = [{transform_indices = @transform_0, window_bounds = array<i64: 8, 896>}, {pipeline_mode = #tpu.pipeline_mode<synchronous>, transform_indices = @transform_1, window_bounds = array<i64: 896, 512>}, {pipeline_mode = #tpu.pipeline_mode<synchronous>, transform_indices = @transform_2, window_bounds = array<i64: 1, 512>}, {pipeline_mode = #tpu.pipeline_mode<synchronous>, transform_indices = @transform_3, window_bounds = array<i64: 512, 256>}, {pipeline_mode = #tpu.pipeline_mode<synchronous>, transform_indices = @transform_4, window_bounds = array<i64: 1, 256>}, {pipeline_mode = #tpu.pipeline_mode<synchronous>, transform_indices = @transform_5, window_bounds = array<i64: 256, 128>}, {pipeline_mode = #tpu.pipeline_mode<synchronous>, transform_indices = @transform_6, window_bounds = array<i64: 1, 128>}, {transform_indices = @transform_7, window_bounds = array<i64: 8, 128>}]} {
    %c0 = arith.constant 0 : index
    %c0_0 = arith.constant 0 : index
    %0 = vector.load %arg1[%c0, %c0_0] : memref<8x896xbf16, #tpu.memory_space<vmem>>, vector<8x896xbf16>
    %c0_1 = arith.constant 0 : index
    %c0_2 = arith.constant 0 : index
    %1 = vector.load %arg2[%c0_1, %c0_2] : memref<896x512xbf16, #tpu.memory_space<vmem>>, vector<896x512xbf16>
    %cst = arith.constant dense<0.000000e+00> : vector<8x512xf32>
    %2 = tpu.matmul %0, %1, %cst {dimension_numbers = #tpu.dot_dimension_numbers<[1], [0], [0], [1], [0, 0, 1, 1], [], []>} : vector<8x896xbf16>, vector<896x512xbf16>, vector<8x512xf32> -> vector<8x512xf32>
    %c0_3 = arith.constant 0 : index
    %c0_4 = arith.constant 0 : index
    %3 = vector.load %arg3[%c0_3, %c0_4] : memref<1x512xf32, #tpu.memory_space<vmem>>, vector<1x512xf32>
    %4 = vector.broadcast %3 : vector<1x512xf32> to vector<8x512xf32>
    %5 = arith.addf %2, %4 : vector<8x512xf32>
    %cst_5 = arith.constant 0.000000e+00 : f32
    %6 = vector.broadcast %cst_5 : f32 to vector<8x512xf32>
    %7 = arith.maximumf %5, %6 : vector<8x512xf32>
    %8 = arith.truncf %7 : vector<8x512xf32> to vector<8x512xbf16>
    %c0_6 = arith.constant 0 : index
    %c0_7 = arith.constant 0 : index
    %9 = vector.load %arg4[%c0_6, %c0_7] : memref<512x256xbf16, #tpu.memory_space<vmem>>, vector<512x256xbf16>
    %cst_8 = arith.constant dense<0.000000e+00> : vector<8x256xf32>
    %10 = tpu.matmul %8, %9, %cst_8 {dimension_numbers = #tpu.dot_dimension_numbers<[1], [0], [0], [1], [0, 0, 1, 1], [], []>} : vector<8x512xbf16>, vector<512x256xbf16>, vector<8x256xf32> -> vector<8x256xf32>
    %c0_9 = arith.constant 0 : index
    %c0_10 = arith.constant 0 : index
    %11 = vector.load %arg5[%c0_9, %c0_10] : memref<1x256xf32, #tpu.memory_space<vmem>>, vector<1x256xf32>
    %12 = vector.broadcast %11 : vector<1x256xf32> to vector<8x256xf32>
    %13 = arith.addf %10, %12 : vector<8x256xf32>
    %cst_11 = arith.constant 0.000000e+00 : f32
    %14 = vector.broadcast %cst_11 : f32 to vector<8x256xf32>
    %15 = arith.maximumf %13, %14 : vector<8x256xf32>
    %16 = arith.truncf %15 : vector<8x256xf32> to vector<8x256xbf16>
    %c0_12 = arith.constant 0 : index
    %c0_13 = arith.constant 0 : index
    %17 = vector.load %arg6[%c0_12, %c0_13] : memref<256x128xbf16, #tpu.memory_space<vmem>>, vector<256x128xbf16>
    %cst_14 = arith.constant dense<0.000000e+00> : vector<8x128xf32>
    %18 = tpu.matmul %16, %17, %cst_14 {dimension_numbers = #tpu.dot_dimension_numbers<[1], [0], [0], [1], [0, 0, 1, 1], [], []>} : vector<8x256xbf16>, vector<256x128xbf16>, vector<8x128xf32> -> vector<8x128xf32>
    %c0_15 = arith.constant 0 : index
    %c0_16 = arith.constant 0 : index
    %19 = vector.load %arg7[%c0_15, %c0_16] : memref<1x128xf32, #tpu.memory_space<vmem>>, vector<1x128xf32>
    %20 = vector.broadcast %19 : vector<1x128xf32> to vector<8x128xf32>
    %21 = arith.addf %18, %20 : vector<8x128xf32>
    %c0_17 = arith.constant 0 : index
    %c0_18 = arith.constant 0 : index
    %22 = vector.load %arg8[%c0_17, %c0_18] : memref<8x128xf32, #tpu.memory_space<vmem>>, vector<8x128xf32>
    tpu.vector_store %arg8[%c0_17, %c0_18], %21 {strides = array<i32>} : memref<8x128xf32, #tpu.memory_space<vmem>>, vector<8x128xf32>,
    return
  }
  func.func @transform_0(%arg0: i32) -> (i32, i32) {
    %c0_i32 = arith.constant 0 : i32
    %c0_i32_0 = arith.constant 0 : i32
    return %arg0, %c0_i32 : i32, i32
  }
  func.func @transform_1(%arg0: i32) -> (i32, i32) {
    %c0_i32 = arith.constant 0 : i32
    %c0_i32_0 = arith.constant 0 : i32
    %c0_i32_1 = arith.constant 0 : i32
    return %c0_i32, %c0_i32_0 : i32, i32
  }
  func.func @transform_2(%arg0: i32) -> (i32, i32) {
    %c0_i32 = arith.constant 0 : i32
    %c0_i32_0 = arith.constant 0 : i32
    %c0_i32_1 = arith.constant 0 : i32
    return %c0_i32, %c0_i32_0 : i32, i32
  }
  func.func @transform_3(%arg0: i32) -> (i32, i32) {
    %c0_i32 = arith.constant 0 : i32
    %c0_i32_0 = arith.constant 0 : i32
    %c0_i32_1 = arith.constant 0 : i32
    return %c0_i32, %c0_i32_0 : i32, i32
  }
  func.func @transform_4(%arg0: i32) -> (i32, i32) {
    %c0_i32 = arith.constant 0 : i32
    %c0_i32_0 = arith.constant 0 : i32
    %c0_i32_1 = arith.constant 0 : i32
    return %c0_i32, %c0_i32_0 : i32, i32
  }
  func.func @transform_5(%arg0: i32) -> (i32, i32) {
    %c0_i32 = arith.constant 0 : i32
    %c0_i32_0 = arith.constant 0 : i32
    %c0_i32_1 = arith.constant 0 : i32
    return %c0_i32, %c0_i32_0 : i32, i32
  }
  func.func @transform_6(%arg0: i32) -> (i32, i32) {
    %c0_i32 = arith.constant 0 : i32
    %c0_i32_0 = arith.constant 0 : i32
    %c0_i32_1 = arith.constant 0 : i32
    return %c0_i32, %c0_i32_0 : i32, i32
  }
  func.func @transform_7(%arg0: i32) -> (i32, i32) {
    %c0_i32 = arith.constant 0 : i32
    %c0_i32_0 = arith.constant 0 : i32
    return %arg0, %c0_i32 : i32, i32
  }
}

</mosaic_0001>

<bundles_post_ra>
// kernel: net_forward.1
= control target key start
LH: loop header
LB: loop body
LE: loop exit
PB: predicated region body
PF: predicated region fallthrough
CT: control target
= control target key end

     0   :  { %s4275_s1 = inlined_call_operand.vmem [shape: bf16[896,512], index: 1, kind: input, shape index: {}]   ;;  %s4276_s0 = inlined_call_operand.vmem [shape: bf16[8,896], index: 0, kind: input, shape index: {}]   ;;  %s4277_s3 = inlined_call_operand.vmem [shape: bf16[512,256], index: 3, kind: input, shape index: {}]   ;;  %s4278_s2 = inlined_call_operand.vmem [shape: f32[1,512], index: 2, kind: input, shape index: {}]   ;;  %s4279_s5 = inlined_call_operand.vmem [shape: bf16[256,128], index: 5, kind: input, shape index: {}]   ;;  %s4280_s4 = inlined_call_operand.vmem [shape: f32[1,256], index: 4, kind: input, shape index: {}]   ;;  %s4281_s6 = inlined_call_operand.vmem [shape: f32[1,128], index: 6, kind: input, shape index: {}]   ;;  %s4282_s7 = inlined_call_operand.vmem [shape: f32[8,128], index: 7, kind: output, shape index: {}]  }
   0x1   :  { %v2787_v0 = vld [vmem:[%s4275_s1 + $0x4] ss:$16 sps:$4 sm:$0xff]   ;;  %v2791_v2 = vld [vmem:[%s4275_s1] ss:$16 sps:$4 sm:$0xff]   ;;  %v28_v48 = vld [vmem:[%s4276_s0 + $0x8] sm:$0xff] }
   0x2   :  { %v2789_v1 = vld [vmem:[%s4275_s1 + $0x204] ss:$16 sps:$4 sm:$0xff]   ;;  %1422 = vmatprep.subr.bf16.mxu1 %v2787_v0  ;;  %v2792_v3 = vld [vmem:[%s4275_s1 + $0x200] ss:$16 sps:$4 sm:$0xff]   ;;  %v3435_v51 = vcombine.high %v28_v48, %v28_v48 }
   0x3   :  { %1463 = vmatprep.subr.bf16.mxu0 %v2789_v1  ;;  %v2793_v4 = vld [vmem:[%s4275_s1 + $0x24] ss:$16 sps:$4 sm:$0xff]   ;;  %1423 = vmatpush1.bf16.msra.mxu1 %v2791_v2  ;;  %v2797_v6 = vld [vmem:[%s4275_s1 + $0x20] ss:$16 sps:$4 sm:$0xff]  }
   0x4   :  { %1464 = vmatpush1.bf16.msra.mxu0 %v2792_v3  ;;  %v2795_v5 = vld [vmem:[%s4275_s1 + $0x224] ss:$16 sps:$4 sm:$0xff]   ;;  %1424 = vmatprep.subr.bf16.mxu1 %v2793_v4  ;;  %v2798_v7 = vld [vmem:[%s4275_s1 + $0x220] ss:$16 sps:$4 sm:$0xff]  }
   0x5   :  { %1465 = vmatprep.subr.bf16.mxu0 %v2795_v5  ;;  %v2799_v8 = vld [vmem:[%s4275_s1 + $0x44] ss:$16 sps:$4 sm:$0xff]   ;;  %v2803_v10 = vld [vmem:[%s4275_s1 + $0x40] ss:$16 sps:$4 sm:$0xff]   ;;  %1495 = vmatprep.mubr.bf16.mxu0 %v3435_v51  ;;  %v2892_v5 = vld [vmem:[%s4275_s1 + $0xc] ss:$16 sps:$4 sm:$0xff]  }
   0x6   :  { %v2801_v9 = vld [vmem:[%s4275_s1 + $0x244] ss:$16 sps:$4 sm:$0xff]   ;;  %v2804_v11 = vld [vmem:[%s4275_s1 + $0x240] ss:$16 sps:$4 sm:$0xff]  }
   0x7   :  { %1425 = vmatpush1.bf16.msra.mxu1 %v2797_v6  ;;  %v2805_v12 = vld [vmem:[%s4275_s1 + $0x64] ss:$16 sps:$4 sm:$0xff]   ;;  %v2809_v14 = vld [vmem:[%s4275_s1 + $0x60] ss:$16 sps:$4 sm:$0xff]  }
   0x8   :  { %1466 = vmatpush1.bf16.msra.mxu0 %v2798_v7  ;;  %1426 = vmatprep.subr.bf16.mxu1 %v2799_v8  ;;  %v2807_v13 = vld [vmem:[%s4275_s1 + $0x264] ss:$16 sps:$4 sm:$0xff]   ;;  %v2810_v15 = vld [vmem:[%s4275_s1 + $0x260] ss:$16 sps:$4 sm:$0xff]   ;;  %v3495_v7 = vcombine.low %v28_v48, %v28_v48 }
   0x9   :  { %1467 = vmatprep.subr.bf16.mxu0 %v2801_v9  ;;  %v2811_v16 = vld [vmem:[%s4275_s1 + $0x84] ss:$16 sps:$4 sm:$0xff]   ;;  %v2815_v18 = vld [vmem:[%s4275_s1 + $0x80] ss:$16 sps:$4 sm:$0xff]   ;;  %v2890_v9 = vld [vmem:[%s4275_s1 + $0x8] ss:$16 sps:$4 sm:$0xff]  }
   0xa   :  { %v2813_v17 = vld [vmem:[%s4275_s1 + $0x284] ss:$16 sps:$4 sm:$0xff]   ;;  %v2816_v19 = vld [vmem:[%s4275_s1 + $0x280] ss:$16 sps:$4 sm:$0xff]  }
   0xb   :  { %1427 = vmatpush1.bf16.msra.mxu1 %v2803_v10  ;;  %v2817_v20 = vld [vmem:[%s4275_s1 + $0xa4] ss:$16 sps:$4 sm:$0xff]   ;;  %v2821_v22 = vld [vmem:[%s4275_s1 + $0xa0] ss:$16 sps:$4 sm:$0xff]  }
   0xc   :  { %1468 = vmatpush1.bf16.msra.mxu0 %v2804_v11  ;;  %1428 = vmatprep.subr.bf16.mxu1 %v2805_v12  ;;  %v2819_v21 = vld [vmem:[%s4275_s1 + $0x2a4] ss:$16 sps:$4 sm:$0xff]   ;;  %v2822_v23 = vld [vmem:[%s4275_s1 + $0x2a0] ss:$16 sps:$4 sm:$0xff]   ;;  %v2898_v11 = vld [vmem:[%s4275_s1 + $0x2c] ss:$16 sps:$4 sm:$0xff]  }
   0xd   :  { %1469 = vmatprep.subr.bf16.mxu0 %v2807_v13  ;;  %v2823_v24 = vld [vmem:[%s4275_s1 + $0xc4] ss:$16 sps:$4 sm:$0xff]   ;;  %v2827_v26 = vld [vmem:[%s4275_s1 + $0xc0] ss:$16 sps:$4 sm:$0xff]   ;;  %v2896_v13 = vld [vmem:[%s4275_s1 + $0x28] ss:$16 sps:$4 sm:$0xff]  }
   0xe   :  { %v2825_v25 = vld [vmem:[%s4275_s1 + $0x2c4] ss:$16 sps:$4 sm:$0xff]   ;;  %v2828_v27 = vld [vmem:[%s4275_s1 + $0x2c0] ss:$16 sps:$4 sm:$0xff]  }
   0xf   :  { %1429 = vmatpush1.bf16.msra.mxu1 %v2809_v14  ;;  %v2829_v28 = vld [vmem:[%s4275_s1 + $0xe4] ss:$16 sps:$4 sm:$0xff]   ;;  %v2833_v30 = vld [vmem:[%s4275_s1 + $0xe0] ss:$16 sps:$4 sm:$0xff]  }
  0x10   :  { %1470 = vmatpush1.bf16.msra.mxu0 %v2810_v15  ;;  %1430 = vmatprep.subr.bf16.mxu1 %v2811_v16  ;;  %v2831_v29 = vld [vmem:[%s4275_s1 + $0x2e4] ss:$16 sps:$4 sm:$0xff]   ;;  %v2834_v31 = vld [vmem:[%s4275_s1 + $0x2e0] ss:$16 sps:$4 sm:$0xff]   ;;  %v2904_v15 = vld [vmem:[%s4275_s1 + $0x4c] ss:$16 sps:$4 sm:$0xff]  }
  0x11   :  { %1471 = vmatprep.subr.bf16.mxu0 %v2813_v17  ;;  %v2835_v32 = vld [vmem:[%s4275_s1 + $0x104] ss:$16 sps:$4 sm:$0xff]   ;;  %v2839_v34 = vld [vmem:[%s4275_s1 + $0x100] ss:$16 sps:$4 sm:$0xff]   ;;  %v2902_v17 = vld [vmem:[%s4275_s1 + $0x48] ss:$16 sps:$4 sm:$0xff]  }
  0x12   :  { %v2837_v33 = vld [vmem:[%s4275_s1 + $0x304] ss:$16 sps:$4 sm:$0xff]   ;;  %v2840_v35 = vld [vmem:[%s4275_s1 + $0x300] ss:$16 sps:$4 sm:$0xff]  }
  0x13   :  { %1431 = vmatpush1.bf16.msra.mxu1 %v2815_v18  ;;  %v2841_v36 = vld [vmem:[%s4275_s1 + $0x124] ss:$16 sps:$4 sm:$0xff]   ;;  %v2845_v38 = vld [vmem:[%s4275_s1 + $0x120] ss:$16 sps:$4 sm:$0xff]  }
  0x14   :  { %1472 = vmatpush1.bf16.msra.mxu0 %v2816_v19  ;;  %1432 = vmatprep.subr.bf16.mxu1 %v2817_v20  ;;  %v2843_v37 = vld [vmem:[%s4275_s1 + $0x324] ss:$16 sps:$4 sm:$0xff]   ;;  %v2846_v39 = vld [vmem:[%s4275_s1 + $0x320] ss:$16 sps:$4 sm:$0xff]   ;;  %v2910_v19 = vld [vmem:[%s4275_s1 + $0x6c] ss:$16 sps:$4 sm:$0xff]  }
  0x15   :  { %1473 = vmatprep.subr.bf16.mxu0 %v2819_v21  ;;  %v2847_v40 = vld [vmem:[%s4275_s1 + $0x144] ss:$16 sps:$4 sm:$0xff]   ;;  %v2851_v42 = vld [vmem:[%s4275_s1 + $0x140] ss:$16 sps:$4 sm:$0xff]   ;;  %v2908_v21 = vld [vmem:[%s4275_s1 + $0x68] ss:$16 sps:$4 sm:$0xff]  }
  0x16   :  { %v2849_v41 = vld [vmem:[%s4275_s1 + $0x344] ss:$16 sps:$4 sm:$0xff]   ;;  %v2852_v43 = vld [vmem:[%s4275_s1 + $0x340] ss:$16 sps:$4 sm:$0xff]  }
  0x17   :  { %1433 = vmatpush1.bf16.msra.mxu1 %v2821_v22  ;;  %v2853_v44 = vld [vmem:[%s4275_s1 + $0x164] ss:$16 sps:$4 sm:$0xff]   ;;  %v2857_v49 = vld [vmem:[%s4275_s1 + $0x160] ss:$16 sps:$4 sm:$0xff]  }
  0x18   :  { %1474 = vmatpush1.bf16.msra.mxu0 %v2822_v23  ;;  %1434 = vmatprep.subr.bf16.mxu1 %v2823_v24  ;;  %v2855_v45 = vld [vmem:[%s4275_s1 + $0x364] ss:$16 sps:$4 sm:$0xff]   ;;  %v2858_v50 = vld [vmem:[%s4275_s1 + $0x360] ss:$16 sps:$4 sm:$0xff]   ;;  %v2916_v23 = vld [vmem:[%s4275_s1 + $0x8c] ss:$16 sps:$4 sm:$0xff]  }
  0x19   :  { %1475 = vmatprep.subr.bf16.mxu0 %v2825_v25  ;;  %v27_v46 = vld [vmem:[%s4276_s0] sm:$0xff]  ;;  %v2914_v25 = vld [vmem:[%s4275_s1 + $0x88] ss:$16 sps:$4 sm:$0xff]  }
  0x1a   :  { %v3424_v47 = vcombine.high %v27_v46, %v27_v46  ;;  %v2859_v52 = vld [vmem:[%s4275_s1 + $0x184] ss:$16 sps:$4 sm:$0xff]   ;;  %v2863_v54 = vld [vmem:[%s4275_s1 + $0x180] ss:$16 sps:$4 sm:$0xff]   ;;  %v3493_v6 = vcombine.low %v27_v46, %v27_v46 }
  0x1b   :  { %1435 = vmatpush1.bf16.msra.mxu1 %v2827_v26  ;;  %v2861_v53 = vld [vmem:[%s4275_s1 + $0x384] ss:$16 sps:$4 sm:$0xff]   ;;  %v2864_v55 = vld [vmem:[%s4275_s1 + $0x380] ss:$16 sps:$4 sm:$0xff]  }
  0x1c   :  { %1476 = vmatpush1.bf16.msra.mxu0 %v2828_v27  ;;  %1436 = vmatprep.subr.bf16.mxu1 %v2829_v28  ;;  %v2865_v56 = vld [vmem:[%s4275_s1 + $0x1a4] ss:$16 sps:$4 sm:$0xff]   ;;  %v2869_v58 = vld [vmem:[%s4275_s1 + $0x1a0] ss:$16 sps:$4 sm:$0xff]   ;;  %v2922_v27 = vld [vmem:[%s4275_s1 + $0xac] ss:$16 sps:$4 sm:$0xff]  }
  0x1d   :  { %1477 = vmatprep.subr.bf16.mxu0 %v2831_v29  ;;  %1454 = vmatprep.mubr.bf16.mxu1 %v3424_v47  ;;  %v2867_v57 = vld [vmem:[%s4275_s1 + $0x3a4] ss:$16 sps:$4 sm:$0xff]   ;;  %v2870_v59 = vld [vmem:[%s4275_s1 + $0x3a0] ss:$16 sps:$4 sm:$0xff]   ;;  %v2920_v29 = vld [vmem:[%s4275_s1 + $0xa8] ss:$16 sps:$4 sm:$0xff]  }
  0x1e   :  { %v2871_v60 = vld [vmem:[%s4275_s1 + $0x1c4] ss:$16 sps:$4 sm:$0xff]   ;;  %v2875_v62 = vld [vmem:[%s4275_s1 + $0x1c0] ss:$16 sps:$4 sm:$0xff]  }
  0x1f   :  { %1437 = vmatpush1.bf16.msra.mxu1 %v2833_v30  ;;  %v2873_v61 = vld [vmem:[%s4275_s1 + $0x3c4] ss:$16 sps:$4 sm:$0xff]   ;;  %v2876_v63 = vld [vmem:[%s4275_s1 + $0x3c0] ss:$16 sps:$4 sm:$0xff]  }
  0x20   :  { %1478 = vmatpush1.bf16.msra.mxu0 %v2834_v31  ;;  %1438 = vmatprep.subr.bf16.mxu1 %v2835_v32  ;;  %v2877_v0 = vld [vmem:[%s4275_s1 + $0x1e4] ss:$16 sps:$4 sm:$0xff]   ;;  %v2881_v2 = vld [vmem:[%s4275_s1 + $0x1e0] ss:$16 sps:$4 sm:$0xff]   ;;  %v2928_v31 = vld [vmem:[%s4275_s1 + $0xcc] ss:$16 sps:$4 sm:$0xff]  }
  0x21   :  { %1479 = vmatprep.subr.bf16.mxu0 %v2837_v33  ;;  %v2879_v1 = vld [vmem:[%s4275_s1 + $0x3e4] ss:$16 sps:$4 sm:$0xff]   ;;  %v2882_v3 = vld [vmem:[%s4275_s1 + $0x3e0] ss:$16 sps:$4 sm:$0xff]  }
  0x22   :  { %v2889_v4 = vld [vmem:[%s4275_s1 + $0x404] ss:$16 sps:$4 sm:$0xff]   ;;  %v2887_v8 = vld [vmem:[%s4275_s1 + $0x400] ss:$16 sps:$4 sm:$0xff]  }
  0x23   :  { %1439 = vmatpush1.bf16.msra.mxu1 %v2839_v34  ;;  %v2895_v10 = vld [vmem:[%s4275_s1 + $0x424] ss:$16 sps:$4 sm:$0xff]   ;;  %v2893_v12 = vld [vmem:[%s4275_s1 + $0x420] ss:$16 sps:$4 sm:$0xff]  }
  0x24   :  { %1480 = vmatpush1.bf16.msra.mxu0 %v2840_v35  ;;  %1440 = vmatprep.subr.bf16.mxu1 %v2841_v36  ;;  %v2901_v14 = vld [vmem:[%s4275_s1 + $0x444] ss:$16 sps:$4 sm:$0xff]   ;;  %v2899_v16 = vld [vmem:[%s4275_s1 + $0x440] ss:$16 sps:$4 sm:$0xff]   ;;  %v2926_v35 = vld [vmem:[%s4275_s1 + $0xc8] ss:$16 sps:$4 sm:$0xff]  }
  0x25   :  { %1481 = vmatprep.subr.bf16.mxu0 %v2843_v37  ;;  %v2907_v18 = vld [vmem:[%s4275_s1 + $0x464] ss:$16 sps:$4 sm:$0xff]   ;;  %v2905_v20 = vld [vmem:[%s4275_s1 + $0x460] ss:$16 sps:$4 sm:$0xff]   ;;  %v2934_v37 = vld [vmem:[%s4275_s1 + $0xec] ss:$16 sps:$4 sm:$0xff]  }
  0x26   :  { %v2913_v22 = vld [vmem:[%s4275_s1 + $0x484] ss:$16 sps:$4 sm:$0xff]   ;;  %v2911_v24 = vld [vmem:[%s4275_s1 + $0x480] ss:$16 sps:$4 sm:$0xff]  }
  0x27   :  { %1441 = vmatpush1.bf16.msra.mxu1 %v2845_v38  ;;  %v2919_v26 = vld [vmem:[%s4275_s1 + $0x4a4] ss:$16 sps:$4 sm:$0xff]   ;;  %v2917_v28 = vld [vmem:[%s4275_s1 + $0x4a0] ss:$16 sps:$4 sm:$0xff]  }
  0x28   :  { %1482 = vmatpush1.bf16.msra.mxu0 %v2846_v39  ;;  %1442 = vmatprep.subr.bf16.mxu1 %v2847_v40  ;;  %v2925_v30 = vld [vmem:[%s4275_s1 + $0x4c4] ss:$16 sps:$4 sm:$0xff]   ;;  %v2923_v33 = vld [vmem:[%s4275_s1 + $0x4c0] ss:$16 sps:$4 sm:$0xff]   ;;  %v2932_v39 = vld [vmem:[%s4275_s1 + $0xe8] ss:$16 sps:$4 sm:$0xff]  }
  0x29   :  { %1483 = vmatprep.subr.bf16.mxu0 %v2849_v41  ;;  %v3575_v32 = vld [vmem:[%s4276_s0 + $0x10] sm:$0xff]  ;;  %v2940_v41 = vld [vmem:[%s4275_s1 + $0x10c] ss:$16 sps:$4 sm:$0xff]  }
  0x2a   :  { %v3582_v34 = vcombine.high %v3575_v32, %v3575_v32  ;;  %v2931_v36 = vld [vmem:[%s4275_s1 + $0x4e4] ss:$16 sps:$4 sm:$0xff]   ;;  %v2929_v38 = vld [vmem:[%s4275_s1 + $0x4e0] ss:$16 sps:$4 sm:$0xff]  }
  0x2b   :  { %1443 = vmatpush1.bf16.msra.mxu1 %v2851_v42  ;;  %v2937_v40 = vld [vmem:[%s4275_s1 + $0x504] ss:$16 sps:$4 sm:$0xff]   ;;  %v2935_v42 = vld [vmem:[%s4275_s1 + $0x500] ss:$16 sps:$4 sm:$0xff]  }
  0x2c   :  { %1484 = vmatpush1.bf16.msra.mxu0 %v2852_v43  ;;  %1444 = vmatprep.subr.bf16.mxu1 %v2853_v44  ;;  %v2938_v43 = vld [vmem:[%s4275_s1 + $0x108] ss:$16 sps:$4 sm:$0xff]   ;;  %v2943_v44 = vld [vmem:[%s4275_s1 + $0x524] ss:$16 sps:$4 sm:$0xff]   ;;  %v2941_v46 = vld [vmem:[%s4275_s1 + $0x520] ss:$16 sps:$4 sm:$0xff]  }
  0x2d   :  { %1485 = vmatprep.subr.bf16.mxu0 %v2855_v45  ;;  %v2946_v45 = vld [vmem:[%s4275_s1 + $0x12c] ss:$16 sps:$4 sm:$0xff]   ;;  %v2949_v48 = vld [vmem:[%s4275_s1 + $0x544] ss:$16 sps:$4 sm:$0xff]  }
  0x2f   :  { %1445 = vmatpush1.bf16.msra.mxu1 %v2857_v49  ;;  %v2952_v49 = vld [vmem:[%s4275_s1 + $0x14c] ss:$16 sps:$4 sm:$0xff]  }
  0x30   :  { %1486 = vmatpush1.bf16.msra.mxu0 %v2858_v50  ;;  %1446 = vmatprep.subr.bf16.mxu1 %v2859_v52  ;;  %v2947_v50 = vld [vmem:[%s4275_s1 + $0x540] ss:$16 sps:$4 sm:$0xff]   ;;  %v2950_v52 = vld [vmem:[%s4275_s1 + $0x148] ss:$16 sps:$4 sm:$0xff]  }
  0x31   :  { %1487 = vmatprep.subr.bf16.mxu0 %v2861_v53  ;;  %v2955_v53 = vld [vmem:[%s4275_s1 + $0x564] ss:$16 sps:$4 sm:$0xff]  }
  0x33   :  { %1447 = vmatpush1.bf16.msra.mxu1 %v2863_v54  ;;  %v2958_v54 = vld [vmem:[%s4275_s1 + $0x16c] ss:$16 sps:$4 sm:$0xff]  }
  0x34   :  { %1488 = vmatpush1.bf16.msra.mxu0 %v2864_v55  ;;  %1448 = vmatprep.subr.bf16.mxu1 %v2865_v56  ;;  %v2953_v55 = vld [vmem:[%s4275_s1 + $0x560] ss:$16 sps:$4 sm:$0xff]   ;;  %v2956_v56 = vld [vmem:[%s4275_s1 + $0x168] ss:$16 sps:$4 sm:$0xff]  }
  0x35   :  { %1489 = vmatprep.subr.bf16.mxu0 %v2867_v57  ;;  %v2961_v57 = vld [vmem:[%s4275_s1 + $0x584] ss:$16 sps:$4 sm:$0xff]  }
  0x37   :  { %1449 = vmatpush1.bf16.msra.mxu1 %v2869_v58  ;;  %v2964_v58 = vld [vmem:[%s4275_s1 + $0x18c] ss:$16 sps:$4 sm:$0xff]  }
  0x38   :  { %1490 = vmatpush1.bf16.msra.mxu0 %v2870_v59  ;;  %1450 = vmatprep.subr.bf16.mxu1 %v2871_v60  ;;  %v2959_v59 = vld [vmem:[%s4275_s1 + $0x580] ss:$16 sps:$4 sm:$0xff]   ;;  %v2962_v60 = vld [vmem:[%s4275_s1 + $0x188] ss:$16 sps:$4 sm:$0xff]  }
  0x39   :  { %1491 = vmatprep.subr.bf16.mxu0 %v2873_v61  ;;  %v2967_v61 = vld [vmem:[%s4275_s1 + $0x5a4] ss:$16 sps:$4 sm:$0xff]  }
  0x3b   :  { %1451 = vmatpush1.bf16.msra.mxu1 %v2875_v62  ;;  %v2970_v62 = vld [vmem:[%s4275_s1 + $0x1ac] ss:$16 sps:$4 sm:$0xff]  }
  0x3c   :  { %1492 = vmatpush1.bf16.msra.mxu0 %v2876_v63  ;;  %1452 = vmatprep.subr.bf16.mxu1 %v2877_v0  ;;  %v2965_v63 = vld [vmem:[%s4275_s1 + $0x5a0] ss:$16 sps:$4 sm:$0xff]   ;;  %v2968_v0 = vld [vmem:[%s4275_s1 + $0x1a8] ss:$16 sps:$4 sm:$0xff]  }
  0x3d   :  { %1493 = vmatprep.subr.bf16.mxu0 %v2879_v1  ;;  %v2973_v1 = vld [vmem:[%s4275_s1 + $0x5c4] ss:$16 sps:$4 sm:$0xff]  }
  0x3f   :  { %1453 = vmatpush1.bf16.msra.mxu1 %v2881_v2  ;;  %v2976_v2 = vld [vmem:[%s4275_s1 + $0x1cc] ss:$16 sps:$4 sm:$0xff]  }
  0x40   :  { %1494 = vmatpush1.bf16.msra.mxu0 %v2882_v3  ;;  %1586 = vmatprep.subr.bf16.mxu1 %v2892_v5  ;;  %v2971_v3 = vld [vmem:[%s4275_s1 + $0x5c0] ss:$16 sps:$4 sm:$0xff]   ;;  %v2979_v5 = vld [vmem:[%s4275_s1 + $0x5e4] ss:$16 sps:$4 sm:$0xff]  }
  0x41   :  { %1504 = vmatprep.subr.bf16.mxu0 %v2889_v4  ;;  %v2974_v4 = vld [vmem:[%s4275_s1 + $0x1c8] ss:$16 sps:$4 sm:$0xff]  }
  0x42   :  { %1455 = vmatmul.mubr.bf16.vlgmr.msra.gmra.mrb[0].mxu1 %v3493_v6 }
  0x43   :  { %1496 = vmatmul.mubr.bf16.vlgmr.msra.gmra.mrb[0].mxu0 %v3495_v7  ;;  %1587 = vmatpush1.bf16.msra.mxu1 %v2890_v9  ;;  %v2977_v9 = vld [vmem:[%s4275_s1 + $0x5e0] ss:$16 sps:$4 sm:$0xff]  }
  0x44   :  { %1505 = vmatpush1.bf16.msra.mxu0 %v2887_v8  ;;  %1588 = vmatprep.subr.bf16.mxu1 %v2898_v11  ;;  %v2982_v8 = vld [vmem:[%s4275_s1 + $0x1ec] ss:$16 sps:$4 sm:$0xff]   ;;  %v2987_v11 = vld [vmem:[%s4275_s1 + $0x604] ss:$16 sps:$4 sm:$0xff]  }
  0x45   :  { %1506 = vmatprep.subr.bf16.mxu0 %v2895_v10  ;;  %1618 = vmatprep.mubr.bf16.mxu1 %v3424_v47  ;;  %v2944_v47 = vld [vmem:[%s4275_s1 + $0x128] ss:$16 sps:$4 sm:$0xff]  }
  0x46   :  { %1536 = vmatprep.mubr.bf16.mxu0 %v3582_v34  ;;  %v2980_v10 = vld [vmem:[%s4275_s1 + $0x1e8] ss:$16 sps:$4 sm:$0xff]  }
  0x47   :  { %1589 = vmatpush1.bf16.msra.mxu1 %v2896_v13  ;;  %v3704_v13 = vcombine.low %v3575_v32, %v3575_v32  ;;  %v3020_v32 = vld [vmem:[%s4275_s1 + $0x2ac] ss:$16 sps:$4 sm:$0xff]  }
  0x48   :  { %1507 = vmatpush1.bf16.msra.mxu0 %v2893_v12  ;;  %1590 = vmatprep.subr.bf16.mxu1 %v2904_v15  ;;  %v2990_v12 = vld [vmem:[%s4275_s1 + $0x20c] ss:$16 sps:$4 sm:$0xff]   ;;  %v2988_v15 = vld [vmem:[%s4275_s1 + $0x208] ss:$16 sps:$4 sm:$0xff]  }
  0x49   :  { %1508 = vmatprep.subr.bf16.mxu0 %v2901_v14  ;;  %v2985_v14 = vld [vmem:[%s4275_s1 + $0x600] ss:$16 sps:$4 sm:$0xff]  }
  0x4b   :  { %1591 = vmatpush1.bf16.msra.mxu1 %v2902_v17  ;;  %v2996_v17 = vld [vmem:[%s4275_s1 + $0x22c] ss:$16 sps:$4 sm:$0xff]  }
  0x4c   :  { %1509 = vmatpush1.bf16.msra.mxu0 %v2899_v16  ;;  %1592 = vmatprep.subr.bf16.mxu1 %v2910_v19  ;;  %v2993_v16 = vld [vmem:[%s4275_s1 + $0x624] ss:$16 sps:$4 sm:$0xff]   ;;  %v2994_v19 = vld [vmem:[%s4275_s1 + $0x228] ss:$16 sps:$4 sm:$0xff]  }
  0x4d   :  { %1510 = vmatprep.subr.bf16.mxu0 %v2907_v18  ;;  %v2991_v18 = vld [vmem:[%s4275_s1 + $0x620] ss:$16 sps:$4 sm:$0xff]  }
  0x4f   :  { %1593 = vmatpush1.bf16.msra.mxu1 %v2908_v21  ;;  %v3242_v21 = vmov 0  }
  0x50   :  { %1511 = vmatpush1.bf16.msra.mxu0 %v2905_v20  ;;  %1594 = vmatprep.subr.bf16.mxu1 %v2916_v23  ;;  %v2999_v20 = vld [vmem:[%s4275_s1 + $0x644] ss:$16 sps:$4 sm:$0xff]   ;;  %v3000_v23 = vld [vmem:[%s4275_s1 + $0x248] ss:$16 sps:$4 sm:$0xff]  }
  0x51   :  { %1512 = vmatprep.subr.bf16.mxu0 %v2913_v22  ;;  %v2997_v22 = vld [vmem:[%s4275_s1 + $0x640] ss:$16 sps:$4 sm:$0xff]  }
  0x53   :  { %1595 = vmatpush1.bf16.msra.mxu1 %v2914_v25  ;;  %v3003_v25 = vld [vmem:[%s4275_s1 + $0x660] ss:$16 sps:$4 sm:$0xff]  }
  0x54   :  { %1513 = vmatpush1.bf16.msra.mxu0 %v2911_v24  ;;  %1596 = vmatprep.subr.bf16.mxu1 %v2922_v27  ;;  %v3005_v24 = vld [vmem:[%s4275_s1 + $0x664] ss:$16 sps:$4 sm:$0xff]  }
  0x55   :  { %1514 = vmatprep.subr.bf16.mxu0 %v2919_v26  ;;  %v3006_v26 = vld [vmem:[%s4275_s1 + $0x268] ss:$16 sps:$4 sm:$0xff]   ;;  %v3011_v27 = vld [vmem:[%s4275_s1 + $0x684] ss:$16 sps:$4 sm:$0xff]  }
  0x57   :  { %1597 = vmatpush1.bf16.msra.mxu1 %v2920_v29  ;;  %v3009_v29 = vld [vmem:[%s4275_s1 + $0x680] ss:$16 sps:$4 sm:$0xff]  }
  0x58   :  { %1515 = vmatpush1.bf16.msra.mxu0 %v2917_v28  ;;  %1598 = vmatprep.subr.bf16.mxu1 %v2928_v31  ;;  %v3014_v28 = vld [vmem:[%s4275_s1 + $0x28c] ss:$16 sps:$4 sm:$0xff]   ;;  %v3017_v31 = vld [vmem:[%s4275_s1 + $0x6a4] ss:$16 sps:$4 sm:$0xff]  }
  0x59   :  { %1516 = vmatprep.subr.bf16.mxu0 %v2925_v30  ;;  %v3012_v30 = vld [vmem:[%s4275_s1 + $0x288] ss:$16 sps:$4 sm:$0xff]  }
  0x5b   :  { %1599 = vmatpush1.bf16.msra.mxu1 %v2926_v35  ;;  %v3018_v35 = vld [vmem:[%s4275_s1 + $0x2a8] ss:$16 sps:$4 sm:$0xff]  }
  0x5c   :  { %1517 = vmatpush1.bf16.msra.mxu0 %v2923_v33  ;;  %1600 = vmatprep.subr.bf16.mxu1 %v2934_v37  ;;  %v3015_v33 = vld [vmem:[%s4275_s1 + $0x6a0] ss:$16 sps:$4 sm:$0xff]   ;;  %v3026_v37 = vld [vmem:[%s4275_s1 + $0x2cc] ss:$16 sps:$4 sm:$0xff]  }
  0x5d   :  { %1518 = vmatprep.subr.bf16.mxu0 %v2931_v36  ;;  %v3023_v36 = vld [vmem:[%s4275_s1 + $0x6c4] ss:$16 sps:$4 sm:$0xff]  }
  0x5f   :  { %1601 = vmatpush1.bf16.msra.mxu1 %v2932_v39  ;;  %v3024_v39 = vld [vmem:[%s4275_s1 + $0x2c8] ss:$16 sps:$4 sm:$0xff]  }
  0x60   :  { %1519 = vmatpush1.bf16.msra.mxu0 %v2929_v38  ;;  %1602 = vmatprep.subr.bf16.mxu1 %v2940_v41  ;;  %v3021_v38 = vld [vmem:[%s4275_s1 + $0x6c0] ss:$16 sps:$4 sm:$0xff]   ;;  %v3032_v41 = vld [vmem:[%s4275_s1 + $0x2ec] ss:$16 sps:$4 sm:$0xff]  }
  0x61   :  { %1520 = vmatprep.subr.bf16.mxu0 %v2937_v40  ;;  %v3029_v40 = vld [vmem:[%s4275_s1 + $0x6e4] ss:$16 sps:$4 sm:$0xff]  }
  0x63   :  { %1603 = vmatpush1.bf16.msra.mxu1 %v2938_v43  ;;  %v3030_v43 = vld [vmem:[%s4275_s1 + $0x2e8] ss:$16 sps:$4 sm:$0xff]  }
  0x64   :  { %1521 = vmatpush1.bf16.msra.mxu0 %v2935_v42  ;;  %1604 = vmatprep.subr.bf16.mxu1 %v2946_v45  ;;  %v3027_v42 = vld [vmem:[%s4275_s1 + $0x6e0] ss:$16 sps:$4 sm:$0xff]   ;;  %v3806_v45 = vld [vmem:[%s4276_s0 + $0x18] ss:$0 sps:$4 sm:$0xff]  }
  0x65   :  { %1522 = vmatprep.subr.bf16.mxu0 %v2943_v44  ;;  %v3036_v44 = vld [vmem:[%s4275_s1 + $0x30c] ss:$16 sps:$4 sm:$0xff]  }
  0x67   :  { %1605 = vmatpush1.bf16.msra.mxu1 %v2944_v47  ;;  %v3039_v47 = vld [vmem:[%s4275_s1 + $0x32c] ss:$16 sps:$4 sm:$0xff]  }
  0x68   :  { %1523 = vmatpush1.bf16.msra.mxu0 %v2941_v46  ;;  %1606 = vmatprep.subr.bf16.mxu1 %v2952_v49  ;;  %v3034_v46 = vld [vmem:[%s4275_s1 + $0x308] ss:$16 sps:$4 sm:$0xff]   ;;  %v3042_v49 = vld [vmem:[%s4275_s1 + $0x34c] ss:$16 sps:$4 sm:$0xff]  }
  0x69   :  { %1524 = vmatprep.subr.bf16.mxu0 %v2949_v48  ;;  %v3037_v48 = vld [vmem:[%s4275_s1 + $0x328] ss:$16 sps:$4 sm:$0xff]  }
  0x6b   :  { %1607 = vmatpush1.bf16.msra.mxu1 %v2950_v52  ;;  %v3132_v52 = vld [vmem:[%s4277_s3 + $0x4] ss:$8 sps:$4 sm:$0xff]  }
  0x6c   :  { %1525 = vmatpush1.bf16.msra.mxu0 %v2947_v50  ;;  %1608 = vmatprep.subr.bf16.mxu1 %v2958_v54  ;;  %v3130_v50 = vld [vmem:[%s4277_s3] ss:$8 sps:$4 sm:$0xff]  }
  0x6d   :  { %1526 = vmatprep.subr.bf16.mxu0 %v2955_v53  ;;  %v3135_v53 = vld [vmem:[%s4277_s3 + $0x14] ss:$8 sps:$4 sm:$0xff]   ;;  %v3040_v54 = vld [vmem:[%s4275_s1 + $0x348] ss:$16 sps:$4 sm:$0xff]  }
  0x6f   :  { %1609 = vmatpush1.bf16.msra.mxu1 %v2956_v56  ;;  %v3133_v56 = vld [vmem:[%s4277_s3 + $0x10] ss:$8 sps:$4 sm:$0xff]  }
  0x70   :  { %1527 = vmatpush1.bf16.msra.mxu0 %v2953_v55  ;;  %1610 = vmatprep.subr.bf16.mxu1 %v2964_v58  ;;  %v3045_v55 = vld [vmem:[%s4275_s1 + $0x36c] ss:$16 sps:$4 sm:$0xff]   ;;  %v3043_v58 = vld [vmem:[%s4275_s1 + $0x368] ss:$16 sps:$4 sm:$0xff]  }
  0x71   :  { %1528 = vmatprep.subr.bf16.mxu0 %v2961_v57  ;;  %v3138_v57 = vld [vmem:[%s4277_s3 + $0x24] ss:$8 sps:$4 sm:$0xff]  }
  0x73   :  { %1611 = vmatpush1.bf16.msra.mxu1 %v2962_v60  ;;  %v3136_v60 = vld [vmem:[%s4277_s3 + $0x20] ss:$8 sps:$4 sm:$0xff]  }
  0x74   :  { %1529 = vmatpush1.bf16.msra.mxu0 %v2959_v59  ;;  %1612 = vmatprep.subr.bf16.mxu1 %v2970_v62  ;;  %v3048_v59 = vld [vmem:[%s4275_s1 + $0x38c] ss:$16 sps:$4 sm:$0xff]   ;;  %v3046_v62 = vld [vmem:[%s4275_s1 + $0x388] ss:$16 sps:$4 sm:$0xff]  }
  0x75   :  { %1530 = vmatprep.subr.bf16.mxu0 %v2967_v61  ;;  %v3141_v61 = vld [vmem:[%s4277_s3 + $0x34] ss:$8 sps:$4 sm:$0xff]  }
  0x77   :  { %1613 = vmatpush1.bf16.msra.mxu1 %v2968_v0  ;;  %v3139_v0 = vld [vmem:[%s4277_s3 + $0x30] ss:$8 sps:$4 sm:$0xff]  }
  0x78   :  { %1531 = vmatpush1.bf16.msra.mxu0 %v2965_v63  ;;  %1614 = vmatprep.subr.bf16.mxu1 %v2976_v2  ;;  %v3051_v63 = vld [vmem:[%s4275_s1 + $0x3ac] ss:$16 sps:$4 sm:$0xff]   ;;  %v3049_v2 = vld [vmem:[%s4275_s1 + $0x3a8] ss:$16 sps:$4 sm:$0xff]  }
  0x79   :  { %1532 = vmatprep.subr.bf16.mxu0 %v2973_v1  ;;  %v3144_v1 = vld [vmem:[%s4277_s3 + $0x44] ss:$8 sps:$4 sm:$0xff]  }
  0x7b   :  { %1615 = vmatpush1.bf16.msra.mxu1 %v2974_v4  ;;  %v3142_v4 = vld [vmem:[%s4277_s3 + $0x40] ss:$8 sps:$4 sm:$0xff]  }
  0x7c   :  { %1533 = vmatpush1.bf16.msra.mxu0 %v2971_v3  ;;  %1616 = vmatprep.subr.bf16.mxu1 %v2982_v8  ;;  %v3054_v3 = vld [vmem:[%s4275_s1 + $0x3cc] ss:$16 sps:$4 sm:$0xff]   ;;  %v3052_v8 = vld [vmem:[%s4275_s1 + $0x3c8] ss:$16 sps:$4 sm:$0xff]  }
  0x7d   :  { %1534 = vmatprep.subr.bf16.mxu0 %v2979_v5  ;;  %v3147_v5 = vld [vmem:[%s4277_s3 + $0x54] ss:$8 sps:$4 sm:$0xff]  }
  0x7f   :  { %1617 = vmatpush1.bf16.msra.mxu1 %v2980_v10  ;;  %v3057_v10 = vld [vmem:[%s4275_s1 + $0x3ec] ss:$16 sps:$4 sm:$0xff]  }
  0x80   :  { %1535 = vmatpush1.bf16.msra.mxu0 %v2977_v9  ;;  %1627 = vmatprep.subr.bf16.mxu1 %v2990_v12  ;;  %v3145_v9 = vld [vmem:[%s4277_s3 + $0x50] ss:$8 sps:$4 sm:$0xff]  }
  0x81   :  { %1545 = vmatprep.subr.bf16.mxu0 %v2987_v11  ;;  %v3150_v11 = vld [vmem:[%s4277_s3 + $0x64] ss:$8 sps:$4 sm:$0xff]   ;;  %v3055_v12 = vld [vmem:[%s4275_s1 + $0x3e8] ss:$16 sps:$4 sm:$0xff]  }
  0x82   :  { %1619 = vmatmul.mubr.bf16.vlgmr.msra.gmra.mrb[4].mxu1 %v3493_v6  ;;  %v3002_v6 = vld [vmem:[%s4275_s1 + $0x24c] ss:$16 sps:$4 sm:$0xff]  }
  0x83   :  { %1537 = vmatmul.mubr.bf16.vlgmr.msra.gmra.mrb[0].mxu0 %v3704_v13  ;;  %1628 = vmatpush1.bf16.msra.mxu1 %v2988_v15  ;;  %v3060_v15 = vld [vmem:[%s4275_s1 + $0x40c] ss:$16 sps:$4 sm:$0xff]  }
  0x84   :  { %1546 = vmatpush1.bf16.msra.mxu0 %v2985_v14  ;;  %1629 = vmatprep.subr.bf16.mxu1 %v2996_v17  ;;  %v3148_v14 = vld [vmem:[%s4277_s3 + $0x60] ss:$8 sps:$4 sm:$0xff]  }
  0x85   :  { %1547 = vmatprep.subr.bf16.mxu0 %v2993_v16  ;;  %1577 = vmatprep.mubr.bf16.mxu0 %v3242_v21  ;;  %v3153_v16 = vld [vmem:[%s4277_s3 + $0x74] ss:$8 sps:$4 sm:$0xff]   ;;  %v3058_v17 = vld [vmem:[%s4275_s1 + $0x408] ss:$16 sps:$4 sm:$0xff]  }
  0x86   :  { %1659 = vmatprep.mubr.bf16.mxu1 %v3435_v51  ;;  %v3008_v51 = vld [vmem:[%s4275_s1 + $0x26c] ss:$16 sps:$4 sm:$0xff]  }
  0x87   :  { %1630 = vmatpush1.bf16.msra.mxu1 %v2994_v19  ;;  %v3151_v19 = vld [vmem:[%s4277_s3 + $0x70] ss:$8 sps:$4 sm:$0xff]  }
  0x88   :  { %1548 = vmatpush1.bf16.msra.mxu0 %v2991_v18  ;;  %1631 = vmatprep.subr.bf16.mxu1 %v3002_v6  ;;  %v3063_v18 = vld [vmem:[%s4275_s1 + $0x42c] ss:$16 sps:$4 sm:$0xff]   ;;  %v3061_v6 = vld [vmem:[%s4275_s1 + $0x428] ss:$16 sps:$4 sm:$0xff]  }
  0x89   :  { %1549 = vmatprep.subr.bf16.mxu0 %v2999_v20  ;;  %v3156_v20 = vld [vmem:[%s4277_s3 + $0x84] ss:$8 sps:$4 sm:$0xff]  }
  0x8b   :  { %1632 = vmatpush1.bf16.msra.mxu1 %v3000_v23  ;;  %v3154_v23 = vld [vmem:[%s4277_s3 + $0x80] ss:$8 sps:$4 sm:$0xff]  }
  0x8c   :  { %1550 = vmatpush1.bf16.msra.mxu0 %v2997_v22  ;;  %1633 = vmatprep.subr.bf16.mxu1 %v3008_v51  ;;  %v3066_v22 = vld [vmem:[%s4275_s1 + $0x44c] ss:$16 sps:$4 sm:$0xff]   ;;  %v3157_v51 = vld [vmem:[%s4277_s3 + $0x90] ss:$8 sps:$4 sm:$0xff]  }
  0x8d   :  { %1551 = vmatprep.subr.bf16.mxu0 %v3005_v24  ;;  %v3069_v24 = vld [vmem:[%s4275_s1 + $0x46c] ss:$16 sps:$4 sm:$0xff]  }
  0x8f   :  { %1634 = vmatpush1.bf16.msra.mxu1 %v3006_v26  ;;  %v3067_v26 = vld [vmem:[%s4275_s1 + $0x468] ss:$16 sps:$4 sm:$0xff]  }
  0x90   :  { %1552 = vmatpush1.bf16.msra.mxu0 %v3003_v25  ;;  %1635 = vmatprep.subr.bf16.mxu1 %v3014_v28  ;;  %v3162_v25 = vld [vmem:[%s4277_s3 + $0xa4] ss:$8 sps:$4 sm:$0xff]   ;;  %v3160_v28 = vld [vmem:[%s4277_s3 + $0xa0] ss:$8 sps:$4 sm:$0xff]  }
  0x91   :  { %1553 = vmatprep.subr.bf16.mxu0 %v3011_v27  ;;  %v3072_v27 = vld [vmem:[%s4275_s1 + $0x48c] ss:$16 sps:$4 sm:$0xff]  }
  0x93   :  { %1636 = vmatpush1.bf16.msra.mxu1 %v3012_v30  ;;  %v3070_v30 = vld [vmem:[%s4275_s1 + $0x488] ss:$16 sps:$4 sm:$0xff]  }
  0x94   :  { %1554 = vmatpush1.bf16.msra.mxu0 %v3009_v29  ;;  %1637 = vmatprep.subr.bf16.mxu1 %v3020_v32  ;;  %v3165_v29 = vld [vmem:[%s4277_s3 + $0xb4] ss:$8 sps:$4 sm:$0xff]   ;;  %v3163_v32 = vld [vmem:[%s4277_s3 + $0xb0] ss:$8 sps:$4 sm:$0xff]  }
  0x95   :  { %1555 = vmatprep.subr.bf16.mxu0 %v3017_v31  ;;  %v3075_v31 = vld [vmem:[%s4275_s1 + $0x4ac] ss:$16 sps:$4 sm:$0xff]  }
  0x97   :  { %1638 = vmatpush1.bf16.msra.mxu1 %v3018_v35  ;;  %v3073_v35 = vld [vmem:[%s4275_s1 + $0x4a8] ss:$16 sps:$4 sm:$0xff]  }
  0x98   :  { %1556 = vmatpush1.bf16.msra.mxu0 %v3015_v33  ;;  %1639 = vmatprep.subr.bf16.mxu1 %v3026_v37  ;;  %v3168_v33 = vld [vmem:[%s4277_s3 + $0xc4] ss:$8 sps:$4 sm:$0xff]   ;;  %v3166_v37 = vld [vmem:[%s4277_s3 + $0xc0] ss:$8 sps:$4 sm:$0xff]  }
  0x99   :  { %1557 = vmatprep.subr.bf16.mxu0 %v3023_v36  ;;  %v3078_v36 = vld [vmem:[%s4275_s1 + $0x4cc] ss:$16 sps:$4 sm:$0xff]  }
  0x9b   :  { %1640 = vmatpush1.bf16.msra.mxu1 %v3024_v39  ;;  %v3076_v39 = vld [vmem:[%s4275_s1 + $0x4c8] ss:$16 sps:$4 sm:$0xff]  }
  0x9c   :  { %1558 = vmatpush1.bf16.msra.mxu0 %v3021_v38  ;;  %1641 = vmatprep.subr.bf16.mxu1 %v3032_v41  ;;  %v3171_v38 = vld [vmem:[%s4277_s3 + $0xd4] ss:$8 sps:$4 sm:$0xff]   ;;  %v3169_v41 = vld [vmem:[%s4277_s3 + $0xd0] ss:$8 sps:$4 sm:$0xff]  }
  0x9d   :  { %1559 = vmatprep.subr.bf16.mxu0 %v3029_v40  ;;  %v3081_v40 = vld [vmem:[%s4275_s1 + $0x4ec] ss:$16 sps:$4 sm:$0xff]  }
  0x9f   :  { %1642 = vmatpush1.bf16.msra.mxu1 %v3030_v43  ;;  %v3084_v43 = vld [vmem:[%s4275_s1 + $0x50c] ss:$16 sps:$4 sm:$0xff]  }
  0xa0   :  { %1560 = vmatpush1.bf16.msra.mxu0 %v3027_v42  ;;  %1643 = vmatprep.subr.bf16.mxu1 %v3036_v44  ;;  %v3079_v42 = vld [vmem:[%s4275_s1 + $0x4e8] ss:$16 sps:$4 sm:$0xff]  }
  0xa1   :  { %2154 = vmatprep.subr.bf16.mxu0 %v3132_v52  ;;  %v3082_v44 = vld [vmem:[%s4275_s1 + $0x508] ss:$16 sps:$4 sm:$0xff]  }
  0xa2   :  { %v3091_v52 = vld [vmem:[%s4275_s1 + $0x568] ss:$16 sps:$4 sm:$0xff]  }
  0xa3   :  { %1578 = vmatmul.mubr.bf16.vlgmr.msra.gmra.mrb[0].mxu0 %v3806_v45  ;;  %1644 = vmatpush1.bf16.msra.mxu1 %v3034_v46  ;;  %v3087_v46 = vld [vmem:[%s4275_s1 + $0x52c] ss:$16 sps:$4 sm:$0xff]  }
  0xa4   :  { %1645 = vmatprep.subr.bf16.mxu1 %v3039_v47  ;;  %2155 = vmatpush1.bf16.msra.mxu0 %v3130_v50  ;;  %v3085_v47 = vld [vmem:[%s4275_s1 + $0x528] ss:$16 sps:$4 sm:$0xff]   ;;  %v3093_v50 = vld [vmem:[%s4275_s1 + $0x56c] ss:$16 sps:$4 sm:$0xff]  }
  0xa5   :  { %2156 = vmatprep.subr.bf16.mxu0 %v3135_v53  ;;  %v3096_v53 = vld [vmem:[%s4275_s1 + $0x58c] ss:$16 sps:$4 sm:$0xff]  }
  0xa7   :  { %1646 = vmatpush1.bf16.msra.mxu1 %v3037_v48  ;;  %v3090_v48 = vld [vmem:[%s4275_s1 + $0x54c] ss:$16 sps:$4 sm:$0xff]  }
  0xa8   :  { %1647 = vmatprep.subr.bf16.mxu1 %v3042_v49  ;;  %2157 = vmatpush1.bf16.msra.mxu0 %v3133_v56  ;;  %v3088_v49 = vld [vmem:[%s4275_s1 + $0x548] ss:$16 sps:$4 sm:$0xff]  }
  0xa9   :  { %2158 = vmatprep.subr.bf16.mxu0 %v3138_v57  ;;  %v3097_v56 = vld [vmem:[%s4275_s1 + $0x5a8] ss:$16 sps:$4 sm:$0xff]   ;;  %v3102_v57 = vld [vmem:[%s4275_s1 + $0x5cc] ss:$16 sps:$4 sm:$0xff]  }
  0xab   :  { %1648 = vmatpush1.bf16.msra.mxu1 %v3040_v54  ;;  %v3094_v54 = vld [vmem:[%s4275_s1 + $0x588] ss:$16 sps:$4 sm:$0xff]  }
  0xac   :  { %1649 = vmatprep.subr.bf16.mxu1 %v3045_v55  ;;  %2159 = vmatpush1.bf16.msra.mxu0 %v3136_v60  ;;  %v3099_v55 = vld [vmem:[%s4275_s1 + $0x5ac] ss:$16 sps:$4 sm:$0xff]   ;;  %v3100_v60 = vld [vmem:[%s4275_s1 + $0x5c8] ss:$16 sps:$4 sm:$0xff]  }
  0xad   :  { %2160 = vmatprep.subr.bf16.mxu0 %v3141_v61  ;;  %v3105_v61 = vld [vmem:[%s4275_s1 + $0x5ec] ss:$16 sps:$4 sm:$0xff]  }
  0xaf   :  { %1650 = vmatpush1.bf16.msra.mxu1 %v3043_v58  ;;  %v3174_v58 = vld [vmem:[%s4277_s3 + $0xe4] ss:$8 sps:$4 sm:$0xff]  }
  0xb0   :  { %1651 = vmatprep.subr.bf16.mxu1 %v3048_v59  ;;  %2161 = vmatpush1.bf16.msra.mxu0 %v3139_v0  ;;  %v3172_v59 = vld [vmem:[%s4277_s3 + $0xe0] ss:$8 sps:$4 sm:$0xff]  }
  0xb1   :  { %2162 = vmatprep.subr.bf16.mxu0 %v3144_v1  ;;  %v3103_v0 = vld [vmem:[%s4275_s1 + $0x5e8] ss:$16 sps:$4 sm:$0xff]   ;;  %v3108_v1 = vld [vmem:[%s4275_s1 + $0x60c] ss:$16 sps:$4 sm:$0xff]  }
  0xb3   :  { %1652 = vmatpush1.bf16.msra.mxu1 %v3046_v62  ;;  %v3177_v62 = vld [vmem:[%s4277_s3 + $0xf4] ss:$8 sps:$4 sm:$0xff]  }
  0xb4   :  { %1653 = vmatprep.subr.bf16.mxu1 %v3051_v63  ;;  %2163 = vmatpush1.bf16.msra.mxu0 %v3142_v4  ;;  %v3175_v63 = vld [vmem:[%s4277_s3 + $0xf0] ss:$8 sps:$4 sm:$0xff]   ;;  %v3111_v4 = vld [vmem:[%s4275_s1 + $0x62c] ss:$16 sps:$4 sm:$0xff]  }
  0xb5   :  { %2164 = vmatprep.subr.bf16.mxu0 %v3147_v5  ;;  %v3109_v5 = vld [vmem:[%s4275_s1 + $0x628] ss:$16 sps:$4 sm:$0xff]  }
  0xb7   :  { %1654 = vmatpush1.bf16.msra.mxu1 %v3049_v2  ;;  %v3180_v2 = vld [vmem:[%s4277_s3 + $0x104] ss:$8 sps:$4 sm:$0xff]  }
  0xb8   :  { %1655 = vmatprep.subr.bf16.mxu1 %v3054_v3  ;;  %2165 = vmatpush1.bf16.msra.mxu0 %v3145_v9  ;;  %v3106_v3 = vld [vmem:[%s4275_s1 + $0x608] ss:$16 sps:$4 sm:$0xff]  }
  0xb9   :  { %2166 = vmatprep.subr.bf16.mxu0 %v3150_v11  ;;  %v3112_v9 = vld [vmem:[%s4275_s1 + $0x648] ss:$16 sps:$4 sm:$0xff]  }
  0xba   :  { %v3118_v11 = vld [vmem:[%s4275_s1 + $0x688] ss:$16 sps:$4 sm:$0xff]  }
  0xbb   :  { %1656 = vmatpush1.bf16.msra.mxu1 %v3052_v8  ;;  %v3114_v8 = vld [vmem:[%s4275_s1 + $0x64c] ss:$16 sps:$4 sm:$0xff]  }
  0xbc   :  { %1657 = vmatprep.subr.bf16.mxu1 %v3057_v10  ;;  %2167 = vmatpush1.bf16.msra.mxu0 %v3148_v14  ;;  %v3120_v10 = vld [vmem:[%s4275_s1 + $0x68c] ss:$16 sps:$4 sm:$0xff]   ;;  %v3121_v14 = vld [vmem:[%s4275_s1 + $0x6a8] ss:$16 sps:$4 sm:$0xff]  }
  0xbd   :  { %2168 = vmatprep.subr.bf16.mxu0 %v3153_v16 }
  0xbf   :  { %1658 = vmatpush1.bf16.msra.mxu1 %v3055_v12  ;;  %v3123_v12 = vld [vmem:[%s4275_s1 + $0x6ac] ss:$16 sps:$4 sm:$0xff]  }
  0xc0   :  { %1668 = vmatprep.subr.bf16.mxu1 %v3060_v15  ;;  %2169 = vmatpush1.bf16.msra.mxu0 %v3151_v19  ;;  %v3126_v15 = vld [vmem:[%s4275_s1 + $0x6cc] ss:$16 sps:$4 sm:$0xff]   ;;  %v3124_v19 = vld [vmem:[%s4275_s1 + $0x6c8] ss:$16 sps:$4 sm:$0xff]  }
  0xc1   :  { %2170 = vmatprep.subr.bf16.mxu0 %v3156_v20 }
  0xc2   :  { %1660 = vmatmul.mubr.bf16.vlgmr.msra.gmra.mrb[4].mxu1 %v3495_v7  ;;  %v3159_v7 = vld [vmem:[%s4277_s3 + $0x94] ss:$8 sps:$4 sm:$0xff]  }
  0xc3   :  { %1669 = vmatpush1.bf16.msra.mxu1 %v3058_v17  ;;  %1700 = vmatprep.mubr.bf16.mxu1 %v3582_v34  ;;  %v3064_v34 = vld [vmem:[%s4275_s1 + $0x448] ss:$16 sps:$4 sm:$0xff]  }
  0xc4   :  { %1670 = vmatprep.subr.bf16.mxu1 %v3063_v18  ;;  %2171 = vmatpush1.bf16.msra.mxu0 %v3154_v23  ;;  %v257_v23 = vlaneseq }
  0xc5   :  { %2172 = vmatprep.subr.bf16.mxu0 %v3159_v7 }
  0xc6   :  { %v4102_v7 = vshrl.u32 %v257_v23, 7 }
  0xc7   :  { %1671 = vmatpush1.bf16.msra.mxu1 %v3061_v6  ;;  %v3129_v6 = vld [vmem:[%s4275_s1 + $0x6ec] ss:$16 sps:$4 sm:$0xff]  }
  0xc8   :  { %1672 = vmatprep.subr.bf16.mxu1 %v3066_v22  ;;  %2173 = vmatpush1.bf16.msra.mxu0 %v3157_v51  ;;  %v3127_v22 = vld [vmem:[%s4275_s1 + $0x6e8] ss:$16 sps:$4 sm:$0xff]   ;;  %v263_v51 = vsub.s32 1, %v4102_v7 }
  0xc9   :  { %2174 = vmatprep.subr.bf16.mxu0 %v3162_v25 }
  0xcb   :  { %1673 = vmatpush1.bf16.msra.mxu1 %v3064_v34  ;;  %v259_v34 = vsub.s32 0, %v4102_v7 }
  0xcc   :  { %1674 = vmatprep.subr.bf16.mxu1 %v3069_v24  ;;  %2175 = vmatpush1.bf16.msra.mxu0 %v3160_v28  ;;  %v4108_v24 = vld [vmem:[%s4278_s2] sm:$0xf] }
  0xcd   :  { %2176 = vmatprep.subr.bf16.mxu0 %v3165_v29  ;;  %v260_v25 = vrot.slane %v4108_v24, %v259_v34 }
  0xcf   :  { %1675 = vmatpush1.bf16.msra.mxu1 %v3067_v26 }
  0xd0   :  { %1676 = vmatprep.subr.bf16.mxu1 %v3072_v27  ;;  %2177 = vmatpush1.bf16.msra.mxu0 %v3163_v32 }
  0xd1   :  { %2178 = vmatprep.subr.bf16.mxu0 %v3168_v33 }
  0xd3   :  { %1677 = vmatpush1.bf16.msra.mxu1 %v3070_v30 }
  0xd4   :  { %1678 = vmatprep.subr.bf16.mxu1 %v3075_v31  ;;  %2179 = vmatpush1.bf16.msra.mxu0 %v3166_v37 }
  0xd5   :  { %2180 = vmatprep.subr.bf16.mxu0 %v3171_v38  ;;  %v3178_v38 = vld [vmem:[%s4277_s3 + $0x100] ss:$8 sps:$4 sm:$0xff]  }
  0xd7   :  { %1679 = vmatpush1.bf16.msra.mxu1 %v3073_v35 }
  0xd8   :  { %1680 = vmatprep.subr.bf16.mxu1 %v3078_v36  ;;  %2181 = vmatpush1.bf16.msra.mxu0 %v3169_v41  ;;  %v3181_v41 = vld [vmem:[%s4277_s3 + $0x110] ss:$8 sps:$4 sm:$0xff]  }
  0xd9   :  { %2182 = vmatprep.subr.bf16.mxu0 %v3174_v58  ;;  %v3233_v58 = vld [vmem:[%s4279_s5 + $0x18] sm:$0xff]  }
  0xdb   :  { %1681 = vmatpush1.bf16.msra.mxu1 %v3076_v39 }
  0xdc   :  { %1682 = vmatprep.subr.bf16.mxu1 %v3081_v40  ;;  %2183 = vmatpush1.bf16.msra.mxu0 %v3172_v59  ;;  %v3183_v40 = vld [vmem:[%s4277_s3 + $0x114] ss:$8 sps:$4 sm:$0xff]   ;;  %v3234_v59 = vld [vmem:[%s4279_s5 + $0x60] sm:$0xff]  }
  0xdd   :  { %2184 = vmatprep.subr.bf16.mxu0 %v3177_v62  ;;  %v3236_v62 = vld [vmem:[%s4279_s5 + $0x68] sm:$0xff]  }
  0xdf   :  { %1683 = vmatpush1.bf16.msra.mxu1 %v3079_v42  ;;  %v3186_v42 = vld [vmem:[%s4277_s3 + $0x124] ss:$8 sps:$4 sm:$0xff]  }
  0xe0   :  { %1684 = vmatprep.subr.bf16.mxu1 %v3084_v43  ;;  %2185 = vmatpush1.bf16.msra.mxu0 %v3175_v63  ;;  %v3226_v43 = vld [vmem:[%s4279_s5 + $0x40] sm:$0xff]  }
  0xe1   :  { %2195 = vmatprep.subr.bf16.mxu0 %v3180_v2  ;;  %v3198_v63 = vld [vmem:[%s4277_s3 + $0x164] ss:$8 sps:$4 sm:$0xff]   ;;  %v3201_v2 = vld [vmem:[%s4277_s3 + $0x174] ss:$8 sps:$4 sm:$0xff]  }
  0xe3   :  { %1685 = vmatpush1.bf16.msra.mxu1 %v3082_v44  ;;  %v3227_v44 = vld [vmem:[%s4279_s5] sm:$0xff]  }
  0xe4   :  { %1686 = vmatprep.subr.bf16.mxu1 %v3087_v46  ;;  %v3184_v46 = vld [vmem:[%s4277_s3 + $0x120] ss:$8 sps:$4 sm:$0xff]  }
  0xe7   :  { %1687 = vmatpush1.bf16.msra.mxu1 %v3085_v47  ;;  %v3228_v47 = vld [vmem:[%s4279_s5 + $0x48] sm:$0xff]  }
  0xe8   :  { %1688 = vmatprep.subr.bf16.mxu1 %v3090_v48  ;;  %v3229_v48 = vld [vmem:[%s4279_s5 + $0x8] sm:$0xff]  }
  0xeb   :  { %1689 = vmatpush1.bf16.msra.mxu1 %v3088_v49  ;;  %v3230_v49 = vld [vmem:[%s4279_s5 + $0x50] sm:$0xff]  }
  0xec   :  { %1690 = vmatprep.subr.bf16.mxu1 %v3093_v50  ;;  %v3189_v50 = vld [vmem:[%s4277_s3 + $0x134] ss:$8 sps:$4 sm:$0xff]  }
  0xef   :  { %1691 = vmatpush1.bf16.msra.mxu1 %v3091_v52  ;;  %v3187_v52 = vld [vmem:[%s4277_s3 + $0x130] ss:$8 sps:$4 sm:$0xff]  }
  0xf0   :  { %1692 = vmatprep.subr.bf16.mxu1 %v3096_v53  ;;  %v3231_v53 = vld [vmem:[%s4279_s5 + $0x10] sm:$0xff]  }
  0xf3   :  { %1693 = vmatpush1.bf16.msra.mxu1 %v3094_v54  ;;  %v3232_v54 = vld [vmem:[%s4279_s5 + $0x58] sm:$0xff]  }
  0xf4   :  { %1694 = vmatprep.subr.bf16.mxu1 %v3099_v55  ;;  %v3192_v55 = vld [vmem:[%s4277_s3 + $0x144] ss:$8 sps:$4 sm:$0xff]  }
  0xf7   :  { %1695 = vmatpush1.bf16.msra.mxu1 %v3097_v56  ;;  %v3190_v56 = vld [vmem:[%s4277_s3 + $0x140] ss:$8 sps:$4 sm:$0xff]  }
  0xf8   :  { %1696 = vmatprep.subr.bf16.mxu1 %v3102_v57  ;;  %v3195_v57 = vld [vmem:[%s4277_s3 + $0x154] ss:$8 sps:$4 sm:$0xff]  }
  0xfb   :  { %1697 = vmatpush1.bf16.msra.mxu1 %v3100_v60  ;;  %v3235_v60 = vld [vmem:[%s4279_s5 + $0x20] sm:$0xff]  }
  0xfc   :  { %1698 = vmatprep.subr.bf16.mxu1 %v3105_v61  ;;  %v3193_v61 = vld [vmem:[%s4277_s3 + $0x150] ss:$8 sps:$4 sm:$0xff]  }
  0xff   :  { %1699 = vmatpush1.bf16.msra.mxu1 %v3103_v0  ;;  %v3237_v0 = vld [vmem:[%s4279_s5 + $0x28] sm:$0xff]  }
 0x100   :  { %1709 = vmatprep.subr.bf16.mxu1 %v3108_v1  ;;  %v3196_v1 = vld [vmem:[%s4277_s3 + $0x160] ss:$8 sps:$4 sm:$0xff]  }
 0x102   :  { %1701 = vmatmul.mubr.bf16.vlgmr.msra.gmra.mrb[4].mxu1 %v3704_v13  ;;  %v3117_v13 = vld [vmem:[%s4275_s1 + $0x66c] ss:$16 sps:$4 sm:$0xff]  }
 0x103   :  { %1710 = vmatpush1.bf16.msra.mxu1 %v3106_v3  ;;  %1741 = vmatprep.mubr.bf16.mxu1 %v3242_v21  ;;  %v3115_v21 = vld [vmem:[%s4275_s1 + $0x668] ss:$16 sps:$4 sm:$0xff]  }
 0x104   :  { %1711 = vmatprep.subr.bf16.mxu1 %v3111_v4  ;;  %v3199_v3 = vld [vmem:[%s4277_s3 + $0x170] ss:$8 sps:$4 sm:$0xff]   ;;  %v3204_v4 = vld [vmem:[%s4277_s3 + $0x184] ss:$8 sps:$4 sm:$0xff]  }
 0x107   :  { %1712 = vmatpush1.bf16.msra.mxu1 %v3109_v5  ;;  %v3202_v5 = vld [vmem:[%s4277_s3 + $0x180] ss:$8 sps:$4 sm:$0xff]  }
 0x108   :  { %1713 = vmatprep.subr.bf16.mxu1 %v3114_v8  ;;  %v3207_v8 = vld [vmem:[%s4277_s3 + $0x194] ss:$8 sps:$4 sm:$0xff]  }
 0x10b   :  { %1714 = vmatpush1.bf16.msra.mxu1 %v3112_v9  ;;  %v3205_v9 = vld [vmem:[%s4277_s3 + $0x190] ss:$8 sps:$4 sm:$0xff]  }
 0x10c   :  { %1715 = vmatprep.subr.bf16.mxu1 %v3117_v13  ;;  %v3210_v13 = vld [vmem:[%s4277_s3 + $0x1a4] ss:$8 sps:$4 sm:$0xff]  }
 0x10f   :  { %1716 = vmatpush1.bf16.msra.mxu1 %v3115_v21  ;;  %v3208_v21 = vld [vmem:[%s4277_s3 + $0x1a0] ss:$8 sps:$4 sm:$0xff]  }
 0x110   :  { %1717 = vmatprep.subr.bf16.mxu1 %v3120_v10  ;;  %v3213_v10 = vld [vmem:[%s4277_s3 + $0x1b4] ss:$8 sps:$4 sm:$0xff]  }
 0x113   :  { %1718 = vmatpush1.bf16.msra.mxu1 %v3118_v11  ;;  %v3211_v11 = vld [vmem:[%s4277_s3 + $0x1b0] ss:$8 sps:$4 sm:$0xff]  }
 0x114   :  { %1719 = vmatprep.subr.bf16.mxu1 %v3123_v12  ;;  %v3216_v12 = vld [vmem:[%s4277_s3 + $0x1c4] ss:$8 sps:$4 sm:$0xff]  }
 0x115   :  { %v1456_v16 = vpop.f32.mrb[0].mxu1 }
 0x116   :  { %v1458_v17 = vpop.f32.mrb[1].mxu1  ;;  %v1457_v26 = vadd.f32 %v1456_v16, %v260_v25  ;;  %v3217_v16 = vld [vmem:[%s4277_s3 + $0x1d0] ss:$8 sps:$4 sm:$0xff]  }
 0x117   :  { %v1460_v18 = vpop.f32.mrb[2].mxu1  ;;  %1720 = vmatpush1.bf16.msra.mxu1 %v3121_v14  ;;  %v3214_v14 = vld [vmem:[%s4277_s3 + $0x1c0] ss:$8 sps:$4 sm:$0xff]  }
 0x118   :  { %v1461_v20 = vpop.f32.mrb[3].mxu1  ;;  %1721 = vmatprep.subr.bf16.mxu1 %v3126_v15  ;;  %v3219_v15 = vld [vmem:[%s4277_s3 + $0x1d4] ss:$8 sps:$4 sm:$0xff]   ;;  %v3220_v18 = vld [vmem:[%s4277_s3 + $0x1e0] ss:$8 sps:$4 sm:$0xff]  }
 0x119   :  { %v3223_v20 = vld [vmem:[%s4277_s3 + $0x1f0] ss:$8 sps:$4 sm:$0xff]  }
 0x11b   :  { %1722 = vmatpush1.bf16.msra.mxu1 %v3124_v19  ;;  %v3225_v19 = vld [vmem:[%s4277_s3 + $0x1f4] ss:$8 sps:$4 sm:$0xff]  }
 0x11c   :  { %1723 = vmatprep.subr.bf16.mxu1 %v3129_v6  ;;  %v267_v6 = vsub.s32 2, %v4102_v7 }
 0x11e   :  { %v268_v23 = vrot.slane %v4108_v24, %v267_v6 }
 0x11f   :  { %1724 = vmatpush1.bf16.msra.mxu1 %v3127_v22  ;;  %v271_v22 = vsub.s32 3, %v4102_v7 }
 0x120   :  { %2732 = vmatprep.subr.bf16.mxu1 %v3226_v43 }
 0x121   :  { %v272_v25 = vrot.slane %v4108_v24, %v271_v22 }
 0x122   :  { %1742 = vmatmul.mubr.bf16.vlgmr.msra.gmra.mrb[4].mxu1 %v3806_v45  ;;  %v264_v45 = vrot.slane %v4108_v24, %v263_v51  ;;  %v3239_v24 = vld [vmem:[%s4279_s5 + $0x30] sm:$0xff]  }
 0x123   :  { %2733 = vmatpush3.bf16.msra.mxu1 %v3227_v44 }
 0x124   :  { %v1459_v27 = vadd.f32 %v1458_v17, %v264_v45  ;;  %2734 = vmatprep.subr.bf16.mxu1 %v3228_v47  ;;  %v3222_v17 = vld [vmem:[%s4277_s3 + $0x1e4] ss:$8 sps:$4 sm:$0xff]  }
 0x127   :  { %2735 = vmatpush3.bf16.msra.mxu1 %v3229_v48 }
 0x128   :  { %2736 = vmatprep.subr.bf16.mxu1 %v3230_v49 }
 0x12b   :  { %2737 = vmatpush3.bf16.msra.mxu1 %v3231_v53 }
 0x12c   :  { %2738 = vmatprep.subr.bf16.mxu1 %v3232_v54 }
 0x12f   :  { %2739 = vmatpush3.bf16.msra.mxu1 %v3233_v58 }
 0x130   :  { %2740 = vmatprep.subr.bf16.mxu1 %v3234_v59 }
 0x133   :  { %2741 = vmatpush3.bf16.msra.mxu1 %v3235_v60 }
 0x134   :  { %2742 = vmatprep.subr.bf16.mxu1 %v3236_v62 }
 0x137   :  { %2743 = vmatpush3.bf16.msra.mxu1 %v3237_v0 }
 0x176   :  { %v1579_v28 = vpop.f32.mrb[0].mxu0 }
 0x177   :  { %v2755_v29 = vadd.f32 %v1579_v28, %v1457_v26  ;;  %v1581_v30 = vpop.f32.mrb[1].mxu0 }
 0x178   :  { %v2757_v31 = vadd.f32 %v1581_v30, %v1459_v27  ;;  %v1583_v32 = vpop.f32.mrb[2].mxu0 }
 0x179   :  { %v1750_v33 = vmax.f32 %v2755_v29, 0.0  ;;  %v1584_v35 = vpop.f32.mrb[3].mxu0 }
 0x17a   :  { %v1751_v36 = vmax.f32 %v2757_v31, 0.0 }
 0x17b   :  { %v1754_v39 = vpack.c.bf16 %v1750_v33, %v1750_v33 }
 0x17c   :  { %v1755_v37 = vpack.c.bf16 %v1751_v36, %v1751_v36  ;;  %v3238_v36 = vld [vmem:[%s4279_s5 + $0x70] sm:$0xff]  }
 0x17d   :  { %2744 = vmatprep.subr.bf16.mxu1 %v3238_v36 }
 0x17e   :  { %2186 = vmatprep.mubr.bf16.mxu0 %v1755_v37  ;;  %2745 = vmatpush3.bf16.msra.mxu1 %v3239_v24  ;;  %v3240_v37 = vld [vmem:[%s4279_s5 + $0x78] sm:$0xff]  }
 0x17f   :  { %2187 = vmatmul.mubr.bf16.vlgmr.msra.gmra.mrb[4].mxu0 %v1754_v39  ;;  %2746 = vmatprep.subr.bf16.mxu1 %v3240_v37  ;;  %v1822_v39 = vld [vmem:[%s4280_s4] sm:$0x3] }
 0x180   :  { %2196 = vmatpush1.bf16.msra.mxu0 %v3178_v38  ;;  %v3241_v38 = vld [vmem:[%s4279_s5 + $0x38] sm:$0xff]  }
 0x181   :  { %2197 = vmatprep.subr.bf16.mxu0 %v3183_v40  ;;  %v1827_v40 = vrot.slane %v1822_v39, %v259_v34  ;;  %v2715_v34 = vld [vmem:[%s4281_s6] ss:$0 sm:$0xff] }
 0x182   :  { %2747 = vmatpush3.bf16.msra.mxu1 %v3241_v38 }
 0x184   :  { %2198 = vmatpush1.bf16.msra.mxu0 %v3181_v41  ;;  %v1831_v41 = vrot.slane %v1822_v39, %v263_v51 }
 0x185   :  { %2199 = vmatprep.subr.bf16.mxu0 %v3186_v42 }
 0x188   :  { %2200 = vmatpush1.bf16.msra.mxu0 %v3184_v46 }
 0x189   :  { %2201 = vmatprep.subr.bf16.mxu0 %v3189_v50 }
 0x18c   :  { %2202 = vmatpush1.bf16.msra.mxu0 %v3187_v52 }
 0x18d   :  { %2203 = vmatprep.subr.bf16.mxu0 %v3192_v55 }
 0x190   :  { %2204 = vmatpush1.bf16.msra.mxu0 %v3190_v56 }
 0x191   :  { %2205 = vmatprep.subr.bf16.mxu0 %v3195_v57 }
 0x194   :  { %2206 = vmatpush1.bf16.msra.mxu0 %v3193_v61 }
 0x195   :  { %2207 = vmatprep.subr.bf16.mxu0 %v3198_v63 }
 0x198   :  { %2208 = vmatpush1.bf16.msra.mxu0 %v3196_v1 }
 0x199   :  { %2209 = vmatprep.subr.bf16.mxu0 %v3201_v2 }
 0x19c   :  { %2210 = vmatpush1.bf16.msra.mxu0 %v3199_v3 }
 0x19d   :  { %2211 = vmatprep.subr.bf16.mxu0 %v3204_v4 }
 0x1a0   :  { %2212 = vmatpush1.bf16.msra.mxu0 %v3202_v5 }
 0x1a1   :  { %2213 = vmatprep.subr.bf16.mxu0 %v3207_v8 }
 0x1a4   :  { %2214 = vmatpush1.bf16.msra.mxu0 %v3205_v9 }
 0x1a5   :  { %2215 = vmatprep.subr.bf16.mxu0 %v3210_v13 }
 0x1a8   :  { %2216 = vmatpush1.bf16.msra.mxu0 %v3208_v21 }
 0x1a9   :  { %2217 = vmatprep.subr.bf16.mxu0 %v3213_v10 }
 0x1ac   :  { %2218 = vmatpush1.bf16.msra.mxu0 %v3211_v11 }
 0x1ad   :  { %2219 = vmatprep.subr.bf16.mxu0 %v3216_v12 }
 0x1b0   :  { %2220 = vmatpush1.bf16.msra.mxu0 %v3214_v14 }
 0x1b1   :  { %2221 = vmatprep.subr.bf16.mxu0 %v3219_v15 }
 0x1b4   :  { %2222 = vmatpush1.bf16.msra.mxu0 %v3217_v16 }
 0x1b5   :  { %2223 = vmatprep.subr.bf16.mxu0 %v3222_v17 }
 0x1b8   :  { %2224 = vmatpush1.bf16.msra.mxu0 %v3220_v18 }
 0x1b9   :  { %2225 = vmatprep.subr.bf16.mxu0 %v3225_v19 }
 0x1bc   :  { %2226 = vmatpush1.bf16.msra.mxu0 %v3223_v20 }
 0x1f5   :  { %v1743_v45 = vpop.f32.mrb[4].mxu1 }
 0x1f6   :  { %v2758_v26 = vadd.f32 %v1743_v45, %v268_v23  ;;  %v1745_v27 = vpop.f32.mrb[5].mxu1 }
 0x1f7   :  { %v2759_v28 = vadd.f32 %v1745_v27, %v272_v25  ;;  %v1747_v29 = vpop.f32.mrb[6].mxu1 }
 0x1f8   :  { %v1752_v30 = vmax.f32 %v2758_v26, 0.0  ;;  %v1748_v31 = vpop.f32.mrb[7].mxu1 }
 0x1f9   :  { %v1753_v32 = vmax.f32 %v2759_v28, 0.0 }
 0x1fa   :  { %v1756_v35 = vpack.c.bf16 %v1752_v30, %v1752_v30 }
 0x1fb   :  { %v1757_v33 = vpack.c.bf16 %v1753_v32, %v1753_v32 }
 0x1fd   :  { %2227 = vmatprep.mubr.bf16.mxu0 %v1757_v33 }
 0x1fe   :  { %2228 = vmatmul.mubr.bf16.vlgmr.msra.gmra.mrb[4].mxu0 %v1756_v35 }
 0x2d1   :  { %v2229_v42 = vpop.f32.mrb[4].mxu0 }
 0x2d2   :  { %v2760_v43 = vadd.f32 %v2229_v42, %v1827_v40  ;;  %v2231_v44 = vpop.f32.mrb[5].mxu0 }
 0x2d3   :  { %v2761_v46 = vadd.f32 %v2231_v44, %v1831_v41  ;;  %v2233_v47 = vpop.f32.mrb[6].mxu0 }
 0x2d4   :  { %v2236_v48 = vmax.f32 %v2760_v43, 0.0  ;;  %v2234_v49 = vpop.f32.mrb[7].mxu0 }
 0x2d5   :  { %v2237_v50 = vmax.f32 %v2761_v46, 0.0 }
 0x2d6   :  { %v2238_v53 = vpack.c.bf16 %v2236_v48, %v2236_v48 }
 0x2d7   :  { %v2239_v52 = vpack.c.bf16 %v2237_v50, %v2237_v50 }
 0x2d9   :  { %2407 = vmatprep.mubr.bf16.mxu1 %v2239_v52 }
 0x2da   :  { %2408 = vmatmul.mubr.bf16.vlgmr.msra.gmra.mrb[8].mxu1 %v2238_v53 }
 0x3ad   :  { %v2748_v54 = vpop.f32.mrb[8].mxu1 }
 0x3ae   :  { %v2749_v55 = vpop.f32.mrb[9].mxu1 }
 0x3af   :  { %v2750_v7 = vadd.f32 %v2749_v55, %v2748_v54  ;;  %v2751_v51 = vpop.f32.mrb[10].mxu1 }
 0x3b0   :  { %v2752_v56 = vpop.f32.mrb[11].mxu1 }
 0x3b1   :  { %v2410_v57 = vadd.f32 %v2750_v7, %v2715_v34 }
 0x3b3   :  { %2415 = vst [vmem:[%s4282_s7] sm:$0xff] %v2410_v57 }

</bundles_post_ra>
